<compile_context>
chip_gen: v7x
topology: tpu7x:2x2x1
jax: 0.10.0
libtpu: 0.0.40
codegen_flags: <defaults>
</compile_context>

<pallas_src>
import jax
import jax.numpy as jnp
from jax.experimental import pallas as pl
from jax.experimental.pallas import tpu as pltpu


LANE = 128


def _round_up(x, m):
    return ((x + m - 1) // m) * m


def _round_down(x, m):
    return (x // m) * m


def _vmem_capacity_bytes():
    """Physical VMEM per TensorCore; conservative 64 MiB fallback (v7x floor)."""
    try:
        info = pltpu.get_tpu_info()
        for name in ("vmem_capacity_bytes", "vmem_size_bytes", "vmem_bytes"):
            v = getattr(info, name, None)
            if v is not None:
                v = int(v)
                if v > 0:
                    return v
    except Exception:
        pass
    try:
        kind = jax.devices()[0].device_kind.lower()
    except Exception:
        kind = ""
    if "v7" in kind or "7x" in kind:
        return 64 * 1024 * 1024
    if any(t in kind for t in ("v4", "v5", "v6")):
        return 128 * 1024 * 1024
    return 64 * 1024 * 1024


def _vmem_budget_and_limit():
    cap = _vmem_capacity_bytes()
    # Leave headroom for compiler-internal scratch:
    #   128 MiB physical (v5e/v6e) -> limit 96 MiB, buffer budget ~80 MiB
    #    64 MiB physical (v7x/TC)  -> limit 48 MiB, buffer budget ~40 MiB
    limit = min(max((cap * 3) // 4, 32 * 1024 * 1024), 96 * 1024 * 1024)
    budget = (limit * 5) // 6
    return budget, limit


def _cls_head_kernel(x_ref, w_ref, b_ref, o_ref):
    # x_ref: (TB, IN)  w_ref: (IN, TN)  b_ref: (1, TN) f32  o_ref: (TB, TN)
    acc = jnp.dot(x_ref[...], w_ref[...], preferred_element_type=jnp.float32)
    o_ref[...] = (acc + b_ref[...]).astype(o_ref.dtype)


def _cls_head_pallas(x, weight, bias):
    B, IN = x.shape
    IN_w, OUT = weight.shape
    assert IN == IN_w, (IN, IN_w)

    x_item = x.dtype.itemsize
    w_item = weight.dtype.itemsize
    out_item = x.dtype.itemsize
    sublane = 16 if x.dtype == jnp.bfloat16 else 8

    budget, limit = _vmem_budget_and_limit()

    # ---- output lane-width decision (bandwidth-aware) ----------------------
    # Pad num_labels to 128 lanes (unmasked vst) only when the padded writeback
    # is small (<= 1/8) relative to the x row that must be read anyway.
    if OUT < LANE and IN * x_item >= 8 * LANE * out_item:
        OUTP = LANE
    else:
        OUTP = OUT  # full-dim block: masked store, but no wasted HBM bytes

    # ---- N (label) tiling: weight/bias tiles are double-buffered ----------
    w_resident_2x = 2 * IN * OUTP * w_item + 2 * OUTP * 4
    if w_resident_2x <= budget // 2 or OUTP <= LANE:
        # TODO(synk): pathological IN (weight alone > VMEM budget with OUTP<=128)
        # would need a K-reduction grid axis; not needed for realistic cls heads.
        TN = OUTP
    else:
        TN = _round_down((budget // 2 - 2 * LANE * 4) // (2 * IN * w_item), LANE)
        TN = max(LANE, min(TN, _round_up(OUTP, LANE)))
    nn = pl.cdiv(OUTP, TN)

    # ---- batch tile from the remaining VMEM budget -------------------------
    resident = 2 * IN * TN * w_item + 2 * TN * 4           # 2x-buffered W + bias
    per_row = 2 * IN * x_item + 2 * TN * out_item          # 2x-buffered x + out rows
    avail = max(budget - resident, per_row * sublane)
    TB = min(1024, avail // per_row)
    if B > sublane:
        # Guarantee >= 2 batch tiles so both TensorCores get work on v7x.
        TB = min(TB, _round_up(pl.cdiv(B, 2), sublane))
    TB = max(sublane, _round_down(TB, sublane))
    TB = min(TB, _round_up(B, sublane))
    nb = pl.cdiv(B, TB)

    # ---- pad weight/bias columns only when lane-dense output was chosen ----
    if OUTP != OUT:
        w_p = jnp.pad(weight, ((0, 0), (0, OUTP - OUT)))
        b_p = jnp.pad(bias, ((0, OUTP - OUT),))
    else:
        w_p, b_p = weight, bias
    b2d = b_p.reshape(1, OUTP).astype(jnp.float32)  # bias added in f32, cast on store

    grid = (nn, nb)  # label tiles outer, batch tiles inner (weight fetched once/tile)

    cost = pl.CostEstimate(
        flops=2 * B * IN * OUTP,
        transcendentals=0,
        bytes_accessed=(nn * B * IN * x_item
                        + IN * OUTP * w_item
                        + B * OUTP * out_item),
    )

    out = pl.pallas_call(
        _cls_head_kernel,
        out_shape=jax.ShapeDtypeStruct((B, OUTP), x.dtype),
        grid_spec=pltpu.PrefetchScalarGridSpec(
            num_scalar_prefetch=0,
            grid=grid,
            in_specs=[
                pl.BlockSpec((TB, IN), lambda j, i: (i, 0)),   # x: streamed per batch tile
                pl.BlockSpec((IN, TN), lambda j, i: (0, j)),   # weight: VMEM-resident per N tile
                pl.BlockSpec((1, TN), lambda j, i: (0, j)),    # bias
            ],
            out_specs=pl.BlockSpec((TB, TN), lambda j, i: (i, j)),
        ),
        compiler_params=pltpu.CompilerParams(
            dimension_semantics=("parallel", "parallel"),  # independent output tiles
            vmem_limit_bytes=limit,
        ),
        cost_estimate=cost,
    )(x, w_p, b2d)

    return out[:, :OUT] if OUTP != OUT else out


def simple_cls_head(x, weight, bias, *, force_pallas=False):
    """Forward of SimpleClsHead.

    x:      (batch, hidden_size * 2)
    weight: (hidden_size * 2, num_labels)   -- transposed from PyTorch (out, in)
    bias:   (num_labels,)
    returns (batch, num_labels)
    """
    B, IN = x.shape
    OUT = weight.shape[1]
    # For small problems the pallas_call launch overhead dwarfs the GEMV; let
    # XLA fuse it unless the caller forces the kernel path.
    tiny = (B * IN + IN * OUT) * x.dtype.itemsize < 512 * 1024
    if not force_pallas and tiny:
        return x @ weight + bias
    return _cls_head_pallas(x, weight, bias)


def init_params(key, hidden_size, num_labels, dtype=jnp.float32):
    """Deterministic init mirroring nn.Linear(hidden_size*2, num_labels)."""
    in_features = hidden_size * 2
    k_w, k_b = jax.random.split(key)
    # PyTorch default: kaiming_uniform_(a=sqrt(5)) -> U(-1/sqrt(in), 1/sqrt(in))
    bound = 1.0 / jnp.sqrt(float(in_features))
    # PyTorch weight is (out, in); we store the transpose (in, out) for the kernel.
    w_t = jax.random.uniform(k_w, (in_features, num_labels), dtype,
                             minval=-bound, maxval=bound)
    b = jax.random.uniform(k_b, (num_labels,), dtype, minval=-bound, maxval=bound)
    return w_t, b


if __name__ == "__main__":
    key = jax.random.PRNGKey(0)
    k1, k2, k3, k4 = jax.random.split(key, 4)

    # Case 1: tiny head, batch NOT a multiple of 8 -> exercises the ragged last
    # batch tile (no wrapper pad) and the unpadded masked-store output path.
    B1, H1, L1 = 10, 32, 8
    x1 = jax.random.normal(k1, (B1, H1 * 2), jnp.float32)
    w1, b1 = init_params(k2, H1, L1)
    out1 = jax.block_until_ready(simple_cls_head(x1, w1, b1, force_pallas=True))
    ref1 = x1 @ w1 + b1
    assert out1.shape == (B1, L1), out1.shape
    assert jnp.allclose(out1, ref1, atol=1e-2, rtol=1e-2)

    # Case 2: wider input -> exercises the lane-dense padded-output path,
    # >=2 batch tiles (megacore), and the final [:, :OUT] slice.
    B2, H2, L2 = 24, 512, 4
    x2 = jax.random.normal(k3, (B2, H2 * 2), jnp.float32)
    w2, b2 = init_params(k4, H2, L2)
    out2 = jax.block_until_ready(simple_cls_head(x2, w2, b2, force_pallas=True))
    ref2 = x2 @ w2 + b2
    assert out2.shape == (B2, L2), out2.shape
    assert jnp.allclose(out2, ref2, atol=1e-2, rtol=1e-2)

    print("KERNEL_OK")
</pallas_src>

<mosaic_0001>
module attributes {stable_mosaic.version = 11 : i64} {
  func.func @_cls_head_kernel(%arg0: i32, %arg1: i32, %arg2: memref<8x64xf32, #tpu.memory_space<vmem>>, %arg3: memref<64x8xf32, #tpu.memory_space<vmem>>, %arg4: memref<1x8xf32, #tpu.memory_space<vmem>>, %arg5: memref<8x8xf32, #tpu.memory_space<vmem>>) attributes {dimension_semantics = [#tpu.dimension_semantics<parallel>, #tpu.dimension_semantics<parallel>], iteration_bounds = array<i64: 1, 2>, scalar_prefetch = 0 : i64, scratch_operands = 0 : i64, tpu.core_type = #tpu.core_type<tc>, window_params = [{transform_indices = @transform_0, window_bounds = array<i64: 8, 64>}, {transform_indices = @transform_1, window_bounds = array<i64: 64, 8>}, {transform_indices = @transform_2, window_bounds = array<i64: 1, 8>}, {transform_indices = @transform_3, window_bounds = array<i64: 8, 8>}]} {
    %c0 = arith.constant 0 : index
    %c0_0 = arith.constant 0 : index
    %0 = vector.load %arg2[%c0, %c0_0] : memref<8x64xf32, #tpu.memory_space<vmem>>, vector<8x64xf32>
    %c0_1 = arith.constant 0 : index
    %c0_2 = arith.constant 0 : index
    %1 = vector.load %arg3[%c0_1, %c0_2] : memref<64x8xf32, #tpu.memory_space<vmem>>, vector<64x8xf32>
    %cst = arith.constant dense<0.000000e+00> : vector<8x8xf32>
    %2 = tpu.matmul %0, %1, %cst {dimension_numbers = #tpu.dot_dimension_numbers<[1], [0], [0], [1], [0, 0, 1, 1], [], []>} : vector<8x64xf32>, vector<64x8xf32>, vector<8x8xf32> -> vector<8x8xf32>
    %c0_3 = arith.constant 0 : index
    %c0_4 = arith.constant 0 : index
    %3 = vector.load %arg4[%c0_3, %c0_4] : memref<1x8xf32, #tpu.memory_space<vmem>>, vector<1x8xf32>
    %4 = vector.broadcast %3 : vector<1x8xf32> to vector<8x8xf32>
    %5 = arith.addf %2, %4 : vector<8x8xf32>
    %c0_5 = arith.constant 0 : index
    %c0_6 = arith.constant 0 : index
    %6 = vector.load %arg5[%c0_5, %c0_6] : memref<8x8xf32, #tpu.memory_space<vmem>>, vector<8x8xf32>
    tpu.vector_store %arg5[%c0_5, %c0_6], %5 {strides = array<i32>} : memref<8x8xf32, #tpu.memory_space<vmem>>, vector<8x8xf32>,
    return
  }
  func.func @transform_0(%arg0: i32, %arg1: i32) -> (i32, i32) {
    %c0_i32 = arith.constant 0 : i32
    %c0_i32_0 = arith.constant 0 : i32
    return %arg1, %c0_i32 : i32, i32
  }
  func.func @transform_1(%arg0: i32, %arg1: i32) -> (i32, i32) {
    %c0_i32 = arith.constant 0 : i32
    %c0_i32_0 = arith.constant 0 : i32
    return %c0_i32, %arg0 : i32, i32
  }
  func.func @transform_2(%arg0: i32, %arg1: i32) -> (i32, i32) {
    %c0_i32 = arith.constant 0 : i32
    %c0_i32_0 = arith.constant 0 : i32
    return %c0_i32, %arg0 : i32, i32
  }
  func.func @transform_3(%arg0: i32, %arg1: i32) -> (i32, i32) {
    %c0_i32 = arith.constant 0 : i32
    return %arg1, %arg0 : i32, i32
  }
}

</mosaic_0001>

<bundles_post_ra>
// kernel: tpu_custom_call.1
= control target key start
LH: loop header
LB: loop body
LE: loop exit
PB: predicated region body
PF: predicated region fallthrough
CT: control target
= control target key end

     0   :  { %s535_s12 = smov 0   ;;  %s537_s13 = smov 0   ;;  %s595_s0 = inlined_call_operand.vmem [shape: f32[10,64], index: 0, kind: input, shape index: {}]   ;;  %s596_s1 = inlined_call_operand.vmem [shape: f32[64,8], index: 1, kind: input, shape index: {}]   ;;  %s597_s2 = inlined_call_operand.vmem [shape: f32[1,8], index: 2, kind: input, shape index: {}]   ;;  %s598_s3 = inlined_call_operand.vmem [shape: f32[10,8], index: 3, kind: output, shape index: {}]  }
   0x1   :  { %s539_s14 = smov 0  }
   0x2 LB: > { %s22_s15 = sadd.s32 1, %s506_s13  ;;  %p414_p0 = scmp.ge.s32.totalorder %s510_s14, 1  ;;  %s510_s14 = sphi %s539_s14, %s13_s14   ;;  %s506_s13 = sphi %s537_s13, %s600_s13   ;;  %s502_s12 = sphi %s535_s12, %s599_s12  }
   0x3   : > { %p23_p1 = scmp.ge.s32.totalorder %s22_s15, 2  ;;  %p167_p2 = scmp.lt.s32.totalorder %s510_s14, 3 }
   0x5   : > { %s602_s15 = smov (%p23_p1, %s22_s15), 0  ;;  %p168_p3 = pnand %p414_p0, %p167_p2 }
   0x6   : > { %v218_v0 = vld [vmem:[%s596_s1] sm:$0xff] (!%p168_p3)  ;;  %v219_v1 = vld [vmem:[%s596_s1 + $0x8] sm:$0xff] (!%p168_p3)  ;;  %v220_v2 = vld [vmem:[%s596_s1 + $0x10] sm:$0xff] (!%p168_p3)  ;;  %v512_v3 = vmov (!%p168_p3), 0.0|0.0   ;;  %vm513_vm0 = vmmov (!%p168_p3), 0   ;;  %v514_v6 = vmov (!%p168_p3), 0.0  }
   0x7   : > { %171 = sbr.rel (%p168_p3) target bundleno = 239 (0xef), region = 32  ;;  %449 = vmatprep.subr.bf16.mxu0 (!%p168_p3), %v512_v3  ;;  %v450_v4 = vpack.c.bf16 (!%p168_p3), %v219_v1, %v218_v0  ;;  %v221_v5 = vld [vmem:[%s596_s1 + $0x18] sm:$0xff] (!%p168_p3)  ;;  %446 = vmatprep.mubr.msk.f32.mxu0 (!%p168_p3), %vm513_vm0, %v514_v6  ;;  %p199_p4 = scmp.lt.s32.totalorder (!%p168_p3), %s502_s12, 1  ;;  %v222_v8 = vld [vmem:[%s596_s1 + $0x20] sm:$0xff] (!%p168_p3)  ;;  %v223_v9 = vld [vmem:[%s596_s1 + $0x28] sm:$0xff] (!%p168_p3)  ;;  %vm233_vm1 = vcmask (!%p168_p3), 523264  }
   0x8   : > { %v453_v7 = vpack.c.bf16 (!%p168_p3), %v221_v5, %v220_v2  ;;  %v456_v10 = vpack.c.bf16 (!%p168_p3), %v223_v9, %v222_v8  ;;  %v224_v11 = vld [vmem:[%s596_s1 + $0x30] sm:$0xff] (!%p168_p3)  ;;  %v225_v12 = vld [vmem:[%s596_s1 + $0x38] sm:$0xff] (!%p168_p3)  ;;  %v417_v15 = vld [vmem:[%s597_s2] ss:$0 sm:$0xff] (!%p168_p3)  ;;  %vm307_vm2 = vcmask (!%p168_p3), 64512  }
   0x9   : > { %451 = vmatpush3.bf16.msra.mxu0 (!%p168_p3), %v450_v4  ;;  %v459_v13 = vpack.c.bf16 (!%p168_p3), %v225_v12, %v224_v11 }
   0xa   : > { %452 = vmatprep.subr.bf16.mxu0 (!%p168_p3), %v512_v3 }
   0xd   : > { %454 = vmatpush3.bf16.msra.mxu0 (!%p168_p3), %v453_v7 }
   0xe   : > { %s604_s12 = smov (!%p199_p4, %s502_s12), 1  ;;  %455 = vmatprep.subr.bf16.mxu0 %v512_v3 }
   0xf   : > { %s415_s5 = sshll.u32 %s604_s12, 3 }
  0x10   : > { %s202_s8 = scalar_lea.vmem %s595_s0, %s415_s5  ;;  %s216_s17 = scalar_lea.vmem %s598_s3, %s415_s5 }
  0x11   : > { %457 = vmatpush3.bf16.msra.mxu0 %v456_v10  ;;  %v217_v14 = vld [vmem:[%s202_s8] sm:$0xff] }
  0x12   : > { %458 = vmatprep.subr.bf16.mxu0 %v512_v3 }
  0x15   : > { %460 = vmatpush3.bf16.msra.mxu0 %v459_v13 }
  0x18   : > { %447 = vmatmul.mubr.msk.f32.vlgmr.msra.gmra.mrb[0].mxu0 %vm233_vm1, %v217_v14 }
  0xeb   : > { %v303_v16 = vpop.f32.mrb[0].mxu0 }
  0xec   : > { %v304_v17 = vadd.f32 %v417_v15, %v303_v16  ;;  %v448_v18 = vpop.f32.mrb[1].mxu0 }
  0xee   : > { %308 = vst.msk [vmem:[%s216_s17] sm:$0xff] %vm307_vm2, %v304_v17 }
  0xef PF: > { %s13_s14 = sadd.s32 1, %s510_s14   ;;  %s599_s12 = smov %s506_s13 }
  0xf0   : > { %p10_p5 = scmp.ge.s32.totalorder %s13_s14, 4   ;;  %s600_s13 = smov %s602_s15 }
  0xf2   :  { %12 = sbr.rel (!%p10_p5) target bundleno = 2 (0x2), region = 68 }

</bundles_post_ra>
